<compile_context>
chip_gen: v7x
topology: tpu7x:2x2x1
jax: 0.10.0
libtpu: 0.0.40
codegen_flags: <defaults>
</compile_context>

<pallas_src>
import functools

import jax
import jax.numpy as jnp
from jax.experimental import pallas as pl
from jax.experimental.pallas import tpu as pltpu


def _confidence_kernel(x_ref, wconv_ref, bconv_ref,
                       w1_ref, b1_ref, w2_ref, b2_ref, w3_ref, b3_ref,
                       out_ref, *, T, K):
    """One tile of TM = (batch elements per tile) * T flattened rows per step.

    x_ref    : (TM, C_in)        bf16, rows are whole batch elements
    wconv_ref: (K, C_in, C_out)  bf16, tap-major, cross-correlation order
    bconv_ref: (1, C_out)        f32
    w1/b1    : (C_out, H) bf16 / (1, H) f32
    w2/b2    : (H, H)     bf16 / (1, H) f32
    w3/b3    : (1, H) f32 / (1, 1) f32
    out_ref  : (1, TM)           f32  lane-dense row of per-timestep scores
    """
    TM, c_in = x_ref.shape
    c_out = wconv_ref.shape[2]
    pad = K // 2

    # f32 working copy for shifting/masking (keeps VPU math in f32; the bf16
    # -> f32 -> bf16 round trip is exact so MXU inputs are unchanged).
    xt = x_ref[...].astype(jnp.float32)                         # (TM, C_in)

    # Local time index of each row inside its batch element (tiles hold whole
    # batch elements, so it is simply row % T).
    t_idx = jax.lax.broadcasted_iota(jnp.int32, (TM, 1), 0) % T

    # Conv2d with a (1, K) kernel == sum over K time-shifted matmuls.  Shifts
    # come from the resident tile (no HBM-side padding); rows whose source
    # would fall outside their batch element are masked to zero.
    acc = jnp.zeros((TM, c_out), dtype=jnp.float32)
    for dk in range(K):
        s = dk - pad
        if s == 0:
            shifted = xt
        elif s > 0:
            shifted = jnp.concatenate(
                [xt[s:, :], jnp.zeros((s, c_in), jnp.float32)], axis=0)
        else:
            shifted = jnp.concatenate(
                [jnp.zeros((-s, c_in), jnp.float32), xt[:s, :]], axis=0)
        valid = jnp.logical_and(t_idx + s >= 0, t_idx + s < T)   # (TM, 1)
        tap = jnp.where(valid, shifted, jnp.zeros_like(shifted))
        acc += jnp.dot(tap.astype(wconv_ref.dtype), wconv_ref[dk],
                       preferred_element_type=jnp.float32)
    h0 = jnp.maximum(acc + bconv_ref[...], 0.0)                  # (TM, C_out) f32

    # MLP hidden layers: bf16 MXU inputs, f32 accumulation, f32 bias/ReLU.
    h1 = jnp.maximum(
        jnp.dot(h0.astype(w1_ref.dtype), w1_ref[...],
                preferred_element_type=jnp.float32) + b1_ref[...], 0.0)
    h2 = jnp.maximum(
        jnp.dot(h1.astype(w2_ref.dtype), w2_ref[...],
                preferred_element_type=jnp.float32) + b2_ref[...], 0.0)

    # Final Linear(H -> 1) as (1,H) x (TM,H)^T -> lane-dense (1, TM) row
    # (avoids a 1-lane-wide matmul output and masked (TM, 1) stores).
    out_row = jax.lax.dot_general(
        w3_ref[...], h2, (((1,), (1,)), ((), ())),
        preferred_element_type=jnp.float32) + b3_ref[...]
    out_ref[...] = out_row.astype(out_ref.dtype)


def confidence_scorer(x, params, *, rows_per_tile=512):
    """x: (B, T, C_in) float32 -> (B, T, 1) float32."""
    wconv, bconv, w1, b1, w2, b2, w3, b3 = params
    B, T, c_in = x.shape
    K, _, c_out = wconv.shape
    hidden = w1.shape[1]
    # PyTorch Conv2d with even K and padding=K//2 produces T+1 outputs; only
    # odd K matches this "same"-length kernel.
    assert K % 2 == 1, "kernel_size[1] must be odd"

    M = B * T
    # Whole batch elements per tile so conv taps never cross a tile boundary.
    bpt = max(1, min(B, rows_per_tile // T))
    while B % bpt:
        bpt -= 1
    TM = bpt * T
    # Respect the (8, 128) block-shape constraints; otherwise fall back to one
    # full-size tile (block == full array dims is always allowed).
    if TM != M and (TM % 8 != 0 or TM % 128 != 0):
        bpt, TM = B, M
    num_tiles = M // TM

    # Flattened (M, C_in) view (free reshape); bf16 activations halve the DMA
    # bytes, accumulation inside the kernel stays f32.
    x2d = x.reshape(M, c_in).astype(jnp.bfloat16)
    # Conv weight stays in cross-correlation tap order, (K, C_in, C_out).
    # (Real PyTorch weights (C_out, C_in, 1, K) convert via
    #  w.squeeze(2).transpose(2, 1, 0) -- no flip.)
    wconv_bf = wconv.astype(jnp.bfloat16)
    w1_bf = w1.astype(jnp.bfloat16)
    w2_bf = w2.astype(jnp.bfloat16)
    bconv2 = bconv.reshape(1, c_out).astype(jnp.float32)
    b1_2 = b1.reshape(1, hidden).astype(jnp.float32)
    b2_2 = b2.reshape(1, hidden).astype(jnp.float32)
    w3_row = w3.reshape(1, hidden).astype(jnp.float32)   # (H,1) -> (1,H)
    b3_2 = b3.reshape(1, 1).astype(jnp.float32)

    kernel = functools.partial(_confidence_kernel, T=T, K=K)

    def full(shape):
        return pl.BlockSpec(shape, lambda i: tuple(0 for _ in shape))

    out = pl.pallas_call(
        kernel,
        out_shape=jax.ShapeDtypeStruct((1, M), jnp.float32),
        grid_spec=pltpu.PrefetchScalarGridSpec(
            num_scalar_prefetch=0,
            grid=(num_tiles,),
            in_specs=[
                pl.BlockSpec((TM, c_in), lambda i: (i, 0)),   # x tile
                full((K, c_in, c_out)),                       # conv weight
                full((1, c_out)),                             # conv bias
                full((c_out, hidden)),                        # w1
                full((1, hidden)),                            # b1
                full((hidden, hidden)),                       # w2
                full((1, hidden)),                            # b2
                full((1, hidden)),                            # w3 (row)
                full((1, 1)),                                 # b3
            ],
            out_specs=pl.BlockSpec((1, TM), lambda i: (0, i)),
        ),
        compiler_params=pltpu.CompilerParams(
            dimension_semantics=("parallel",)),
    )(x2d, wconv_bf, bconv2, w1_bf, b1_2, w2_bf, b2_2, w3_row, b3_2)

    return out.reshape(B, T, 1)


def reference_forward(x, params, matmul_dtype=jnp.float32):
    """Pure-JAX reference of the PyTorch forward (channels-last layout).

    With matmul_dtype=bfloat16 it mirrors the kernel's precision scheme
    (bf16 MXU inputs, f32 accumulation, f32 bias/ReLU, f32 final layer).
    """
    wconv, bconv, w1, b1, w2, b2, w3, b3 = params
    K = wconv.shape[0]
    pad = K // 2
    T = x.shape[1]
    md = matmul_dtype
    xpad = jnp.pad(x.astype(md), ((0, 0), (pad, pad), (0, 0)))
    acc = sum(jnp.einsum('btc,cd->btd', xpad[:, dk:dk + T], wconv[dk].astype(md),
                         preferred_element_type=jnp.float32)
              for dk in range(K)) + bconv
    h = jax.nn.relu(acc)
    h1 = jax.nn.relu(jnp.einsum('btc,cd->btd', h.astype(md), w1.astype(md),
                                preferred_element_type=jnp.float32) + b1)
    h2 = jax.nn.relu(jnp.einsum('btc,cd->btd', h1.astype(md), w2.astype(md),
                                preferred_element_type=jnp.float32) + b2)
    return jnp.einsum('btc,cd->btd', h2, w3,
                      preferred_element_type=jnp.float32) + b3


def init_params(key, in_channels, out_channels, kernel_w):
    """Deterministic synthetic parameters (shapes match the PyTorch module)."""
    hidden = out_channels // 2
    ks = jax.random.split(key, 8)
    sc = 0.1
    # Conv2d weight (C_out, C_in, 1, K) -> stored as (K, C_in, C_out).
    wconv = sc * jax.random.normal(ks[0], (kernel_w, in_channels, out_channels), jnp.float32)
    bconv = sc * jax.random.normal(ks[1], (out_channels,), jnp.float32)
    # nn.Linear weights are (out, in); stored transposed (in, out) so the
    # kernel computes x @ W directly.
    w1 = sc * jax.random.normal(ks[2], (out_channels, hidden), jnp.float32)
    b1 = sc * jax.random.normal(ks[3], (hidden,), jnp.float32)
    w2 = sc * jax.random.normal(ks[4], (hidden, hidden), jnp.float32)
    b2 = sc * jax.random.normal(ks[5], (hidden,), jnp.float32)
    w3 = sc * jax.random.normal(ks[6], (hidden, 1), jnp.float32)
    b3 = sc * jax.random.normal(ks[7], (1,), jnp.float32)
    return (wconv, bconv, w1, b1, w2, b2, w3, b3)


if __name__ == "__main__":
    # Small shapes consistent with the module.
    B, T = 2, 16
    in_channels, out_channels = 32, 32
    kernel_size = (1, 3)          # (H, W) — H must be 1 given the unsqueeze(2)

    key = jax.random.PRNGKey(0)
    kx, kp = jax.random.split(key)
    x = jax.random.normal(kx, (B, T, in_channels), jnp.float32)
    params = init_params(kp, in_channels, out_channels, kernel_size[1])

    out = confidence_scorer(x, params)
    out = jax.block_until_ready(out)
    assert out.shape == (B, T, 1), out.shape

    # Tight check against a reference that uses the kernel's precision scheme
    # (bf16 matmul inputs, f32 accumulation) — differences are accumulation
    # order only.
    ref_bf16 = reference_forward(x, params, matmul_dtype=jnp.bfloat16)
    assert jnp.allclose(out, ref_bf16, atol=2e-3, rtol=2e-3), \
        float(jnp.max(jnp.abs(out - ref_bf16)))

    # Sanity check against the full-f32 PyTorch-equivalent reference.
    ref_f32 = reference_forward(x, params)
    assert jnp.allclose(out, ref_f32, atol=3e-2, rtol=3e-2), \
        float(jnp.max(jnp.abs(out - ref_f32)))

    print("KERNEL_OK")
</pallas_src>

<mosaic_0001>
module attributes {stable_mosaic.version = 11 : i64} {
  func.func @_confidence_kernel(%arg0: i32, %arg1: memref<32x32xbf16, #tpu.memory_space<vmem>>, %arg2: memref<3x32x32xbf16, #tpu.memory_space<vmem>>, %arg3: memref<1x32xf32, #tpu.memory_space<vmem>>, %arg4: memref<32x16xbf16, #tpu.memory_space<vmem>>, %arg5: memref<1x16xf32, #tpu.memory_space<vmem>>, %arg6: memref<16x16xbf16, #tpu.memory_space<vmem>>, %arg7: memref<1x16xf32, #tpu.memory_space<vmem>>, %arg8: memref<1x16xf32, #tpu.memory_space<vmem>>, %arg9: memref<1x1xf32, #tpu.memory_space<vmem>>, %arg10: memref<1x32xf32, #tpu.memory_space<vmem>>) attributes {dimension_semantics = [#tpu.dimension_semantics<parallel>], iteration_bounds = array<i64: 1>, scalar_prefetch = 0 : i64, scratch_operands = 0 : i64, tpu.core_type = #tpu.core_type<tc>, window_params = [{transform_indices = @transform_0, window_bounds = array<i64: 32, 32>}, {pipeline_mode = #tpu.pipeline_mode<synchronous>, transform_indices = @transform_1, window_bounds = array<i64: 3, 32, 32>}, {pipeline_mode = #tpu.pipeline_mode<synchronous>, transform_indices = @transform_2, window_bounds = array<i64: 1, 32>}, {pipeline_mode = #tpu.pipeline_mode<synchronous>, transform_indices = @transform_3, window_bounds = array<i64: 32, 16>}, {pipeline_mode = #tpu.pipeline_mode<synchronous>, transform_indices = @transform_4, window_bounds = array<i64: 1, 16>}, {pipeline_mode = #tpu.pipeline_mode<synchronous>, transform_indices = @transform_5, window_bounds = array<i64: 16, 16>}, {pipeline_mode = #tpu.pipeline_mode<synchronous>, transform_indices = @transform_6, window_bounds = array<i64: 1, 16>}, {pipeline_mode = #tpu.pipeline_mode<synchronous>, transform_indices = @transform_7, window_bounds = array<i64: 1, 16>}, {pipeline_mode = #tpu.pipeline_mode<synchronous>, transform_indices = @transform_8, window_bounds = array<i64: 1, 1>}, {transform_indices = @transform_9, window_bounds = array<i64: 1, 32>}]} {
    %c0 = arith.constant 0 : index
    %c0_0 = arith.constant 0 : index
    %0 = vector.load %arg1[%c0, %c0_0] : memref<32x32xbf16, #tpu.memory_space<vmem>>, vector<32x32xbf16>
    %1 = arith.extf %0 : vector<32x32xbf16> to vector<32x32xf32>
    %2 = tpu.iota {dimensions = array<i32: 0>} : vector<32x1xi32>
    %c16_i32 = arith.constant 16 : i32
    %c0_i32 = arith.constant 0 : i32
    %3 = arith.cmpi eq, %c16_i32, %c0_i32 : i32
    %c1_i32 = arith.constant 1 : i32
    %4 = arith.select %3, %c1_i32, %c16_i32 : i32
    %5 = vector.broadcast %4 : i32 to vector<32x1xi32>
    %6 = arith.remsi %2, %5 : vector<32x1xi32>
    %c0_i32_1 = arith.constant 0 : i32
    %7 = vector.broadcast %c0_i32_1 : i32 to vector<32x1xi32>
    %8 = arith.cmpi ne, %6, %7 : vector<32x1xi32>
    %c0_i32_2 = arith.constant 0 : i32
    %9 = vector.broadcast %c0_i32_2 : i32 to vector<32x1xi32>
    %10 = arith.cmpi slt, %6, %9 : vector<32x1xi32>
    %c0_i32_3 = arith.constant 0 : i32
    %11 = arith.cmpi slt, %4, %c0_i32_3 : i32
    %12 = vector.broadcast %11 : i1 to vector<32x1xi1>
    %13 = vector.broadcast %12 : vector<32x1xi1> to vector<32x1xi1>
    %14 = arith.xori %10, %13 : vector<32x1xi1>
    %15 = arith.andi %14, %8 : vector<32x1xi1>
    %16 = vector.broadcast %4 : i32 to vector<32x1xi32>
    %17 = arith.addi %6, %16 : vector<32x1xi32>
    %18 = arith.select %15, %17, %6 : vector<32x1xi1>, vector<32x1xi32>
    %cst = arith.constant 0.000000e+00 : f32
    %19 = vector.broadcast %cst : f32 to vector<32x32xf32>
    %cst_4 = arith.constant 0.000000e+00 : f32
    %20 = vector.broadcast %cst_4 : f32 to vector<1x32xf32>
    %21 = vector.extract_strided_slice %1 {offsets = [0, 0], sizes = [31, 32], strides = [1, 1]} : vector<32x32xf32> to vector<31x32xf32>
    %22 = tpu.concatenate %20, %21 in 0 : vector<1x32xf32>, vector<31x32xf32> -> vector<32x32xf32>
    %c-1_i32 = arith.constant -1 : i32
    %23 = vector.broadcast %c-1_i32 : i32 to vector<32x1xi32>
    %24 = arith.addi %18, %23 : vector<32x1xi32>
    %c0_i32_5 = arith.constant 0 : i32
    %25 = vector.broadcast %c0_i32_5 : i32 to vector<32x1xi32>
    %26 = arith.cmpi sge, %24, %25 : vector<32x1xi32>
    %c-1_i32_6 = arith.constant -1 : i32
    %27 = vector.broadcast %c-1_i32_6 : i32 to vector<32x1xi32>
    %28 = arith.addi %18, %27 : vector<32x1xi32>
    %c16_i32_7 = arith.constant 16 : i32
    %29 = vector.broadcast %c16_i32_7 : i32 to vector<32x1xi32>
    %30 = arith.cmpi slt, %28, %29 : vector<32x1xi32>
    %31 = arith.andi %26, %30 : vector<32x1xi1>
    %cst_8 = arith.constant 0.000000e+00 : f32
    %32 = vector.broadcast %cst_8 : f32 to vector<32x32xf32>
    %33 = vector.shape_cast %31 : vector<32x1xi1> to vector<32x1xi1>
    %34 = vector.broadcast %33 : vector<32x1xi1> to vector<32x32xi1>
    %35 = arith.select %34, %22, %32 : vector<32x32xi1>, vector<32x32xf32>
    %36 = arith.truncf %35 : vector<32x32xf32> to vector<32x32xbf16>
    %c0_9 = arith.constant 0 : index
    %c0_10 = arith.constant 0 : index
    %c0_11 = arith.constant 0 : index
    %37 = vector.load %arg2[%c0_9, %c0_10, %c0_11] : memref<3x32x32xbf16, #tpu.memory_space<vmem>>, vector<1x32x32xbf16>
    %38 = vector.shape_cast %37 : vector<1x32x32xbf16> to vector<32x32xbf16>
    %cst_12 = arith.constant dense<0.000000e+00> : vector<32x32xf32>
    %39 = tpu.matmul %36, %38, %cst_12 {dimension_numbers = #tpu.dot_dimension_numbers<[1], [0], [0], [1], [0, 0, 1, 1], [], []>} : vector<32x32xbf16>, vector<32x32xbf16>, vector<32x32xf32> -> vector<32x32xf32>
    %40 = arith.addf %19, %39 : vector<32x32xf32>
    %c0_i32_13 = arith.constant 0 : i32
    %41 = vector.broadcast %c0_i32_13 : i32 to vector<32x1xi32>
    %42 = arith.addi %18, %41 : vector<32x1xi32>
    %c0_i32_14 = arith.constant 0 : i32
    %43 = vector.broadcast %c0_i32_14 : i32 to vector<32x1xi32>
    %44 = arith.cmpi sge, %42, %43 : vector<32x1xi32>
    %c0_i32_15 = arith.constant 0 : i32
    %45 = vector.broadcast %c0_i32_15 : i32 to vector<32x1xi32>
    %46 = arith.addi %18, %45 : vector<32x1xi32>
    %c16_i32_16 = arith.constant 16 : i32
    %47 = vector.broadcast %c16_i32_16 : i32 to vector<32x1xi32>
    %48 = arith.cmpi slt, %46, %47 : vector<32x1xi32>
    %49 = arith.andi %44, %48 : vector<32x1xi1>
    %cst_17 = arith.constant 0.000000e+00 : f32
    %50 = vector.broadcast %cst_17 : f32 to vector<32x32xf32>
    %51 = vector.shape_cast %49 : vector<32x1xi1> to vector<32x1xi1>
    %52 = vector.broadcast %51 : vector<32x1xi1> to vector<32x32xi1>
    %53 = arith.select %52, %1, %50 : vector<32x32xi1>, vector<32x32xf32>
    %54 = arith.truncf %53 : vector<32x32xf32> to vector<32x32xbf16>
    %c1 = arith.constant 1 : index
    %c0_18 = arith.constant 0 : index
    %c0_19 = arith.constant 0 : index
    %55 = vector.load %arg2[%c1, %c0_18, %c0_19] : memref<3x32x32xbf16, #tpu.memory_space<vmem>>, vector<1x32x32xbf16>
    %56 = vector.shape_cast %55 : vector<1x32x32xbf16> to vector<32x32xbf16>
    %cst_20 = arith.constant dense<0.000000e+00> : vector<32x32xf32>
    %57 = tpu.matmul %54, %56, %cst_20 {dimension_numbers = #tpu.dot_dimension_numbers<[1], [0], [0], [1], [0, 0, 1, 1], [], []>} : vector<32x32xbf16>, vector<32x32xbf16>, vector<32x32xf32> -> vector<32x32xf32>
    %58 = arith.addf %40, %57 : vector<32x32xf32>
    %59 = vector.extract_strided_slice %1 {offsets = [1, 0], sizes = [31, 32], strides = [1, 1]} : vector<32x32xf32> to vector<31x32xf32>
    %cst_21 = arith.constant 0.000000e+00 : f32
    %60 = vector.broadcast %cst_21 : f32 to vector<1x32xf32>
    %61 = tpu.concatenate %59, %60 in 0 : vector<31x32xf32>, vector<1x32xf32> -> vector<32x32xf32>
    %c1_i32_22 = arith.constant 1 : i32
    %62 = vector.broadcast %c1_i32_22 : i32 to vector<32x1xi32>
    %63 = arith.addi %18, %62 : vector<32x1xi32>
    %c0_i32_23 = arith.constant 0 : i32
    %64 = vector.broadcast %c0_i32_23 : i32 to vector<32x1xi32>
    %65 = arith.cmpi sge, %63, %64 : vector<32x1xi32>
    %c1_i32_24 = arith.constant 1 : i32
    %66 = vector.broadcast %c1_i32_24 : i32 to vector<32x1xi32>
    %67 = arith.addi %18, %66 : vector<32x1xi32>
    %c16_i32_25 = arith.constant 16 : i32
    %68 = vector.broadcast %c16_i32_25 : i32 to vector<32x1xi32>
    %69 = arith.cmpi slt, %67, %68 : vector<32x1xi32>
    %70 = arith.andi %65, %69 : vector<32x1xi1>
    %cst_26 = arith.constant 0.000000e+00 : f32
    %71 = vector.broadcast %cst_26 : f32 to vector<32x32xf32>
    %72 = vector.shape_cast %70 : vector<32x1xi1> to vector<32x1xi1>
    %73 = vector.broadcast %72 : vector<32x1xi1> to vector<32x32xi1>
    %74 = arith.select %73, %61, %71 : vector<32x32xi1>, vector<32x32xf32>
    %75 = arith.truncf %74 : vector<32x32xf32> to vector<32x32xbf16>
    %c2 = arith.constant 2 : index
    %c0_27 = arith.constant 0 : index
    %c0_28 = arith.constant 0 : index
    %76 = vector.load %arg2[%c2, %c0_27, %c0_28] : memref<3x32x32xbf16, #tpu.memory_space<vmem>>, vector<1x32x32xbf16>
    %77 = vector.shape_cast %76 : vector<1x32x32xbf16> to vector<32x32xbf16>
    %cst_29 = arith.constant dense<0.000000e+00> : vector<32x32xf32>
    %78 = tpu.matmul %75, %77, %cst_29 {dimension_numbers = #tpu.dot_dimension_numbers<[1], [0], [0], [1], [0, 0, 1, 1], [], []>} : vector<32x32xbf16>, vector<32x32xbf16>, vector<32x32xf32> -> vector<32x32xf32>
    %79 = arith.addf %58, %78 : vector<32x32xf32>
    %c0_30 = arith.constant 0 : index
    %c0_31 = arith.constant 0 : index
    %80 = vector.load %arg3[%c0_30, %c0_31] : memref<1x32xf32, #tpu.memory_space<vmem>>, vector<1x32xf32>
    %81 = vector.broadcast %80 : vector<1x32xf32> to vector<32x32xf32>
    %82 = arith.addf %79, %81 : vector<32x32xf32>
    %cst_32 = arith.constant 0.000000e+00 : f32
    %83 = vector.broadcast %cst_32 : f32 to vector<32x32xf32>
    %84 = arith.maximumf %82, %83 : vector<32x32xf32>
    %85 = arith.truncf %84 : vector<32x32xf32> to vector<32x32xbf16>
    %c0_33 = arith.constant 0 : index
    %c0_34 = arith.constant 0 : index
    %86 = vector.load %arg4[%c0_33, %c0_34] : memref<32x16xbf16, #tpu.memory_space<vmem>>, vector<32x16xbf16>
    %cst_35 = arith.constant dense<0.000000e+00> : vector<32x16xf32>
    %87 = tpu.matmul %85, %86, %cst_35 {dimension_numbers = #tpu.dot_dimension_numbers<[1], [0], [0], [1], [0, 0, 1, 1], [], []>} : vector<32x32xbf16>, vector<32x16xbf16>, vector<32x16xf32> -> vector<32x16xf32>
    %c0_36 = arith.constant 0 : index
    %c0_37 = arith.constant 0 : index
    %88 = vector.load %arg5[%c0_36, %c0_37] : memref<1x16xf32, #tpu.memory_space<vmem>>, vector<1x16xf32>
    %89 = vector.broadcast %88 : vector<1x16xf32> to vector<32x16xf32>
    %90 = arith.addf %87, %89 : vector<32x16xf32>
    %cst_38 = arith.constant 0.000000e+00 : f32
    %91 = vector.broadcast %cst_38 : f32 to vector<32x16xf32>
    %92 = arith.maximumf %90, %91 : vector<32x16xf32>
    %93 = arith.truncf %92 : vector<32x16xf32> to vector<32x16xbf16>
    %c0_39 = arith.constant 0 : index
    %c0_40 = arith.constant 0 : index
    %94 = vector.load %arg6[%c0_39, %c0_40] : memref<16x16xbf16, #tpu.memory_space<vmem>>, vector<16x16xbf16>
    %cst_41 = arith.constant dense<0.000000e+00> : vector<32x16xf32>
    %95 = tpu.matmul %93, %94, %cst_41 {dimension_numbers = #tpu.dot_dimension_numbers<[1], [0], [0], [1], [0, 0, 1, 1], [], []>} : vector<32x16xbf16>, vector<16x16xbf16>, vector<32x16xf32> -> vector<32x16xf32>
    %c0_42 = arith.constant 0 : index
    %c0_43 = arith.constant 0 : index
    %96 = vector.load %arg7[%c0_42, %c0_43] : memref<1x16xf32, #tpu.memory_space<vmem>>, vector<1x16xf32>
    %97 = vector.broadcast %96 : vector<1x16xf32> to vector<32x16xf32>
    %98 = arith.addf %95, %97 : vector<32x16xf32>
    %cst_44 = arith.constant 0.000000e+00 : f32
    %99 = vector.broadcast %cst_44 : f32 to vector<32x16xf32>
    %100 = arith.maximumf %98, %99 : vector<32x16xf32>
    %c0_45 = arith.constant 0 : index
    %c0_46 = arith.constant 0 : index
    %101 = vector.load %arg8[%c0_45, %c0_46] : memref<1x16xf32, #tpu.memory_space<vmem>>, vector<1x16xf32>
    %cst_47 = arith.constant dense<0.000000e+00> : vector<1x32xf32>
    %102 = tpu.matmul %101, %100, %cst_47 {dimension_numbers = #tpu.dot_dimension_numbers<[1], [1], [0], [0], [0, 0, 1, 0], [], []>} : vector<1x16xf32>, vector<32x16xf32>, vector<1x32xf32> -> vector<1x32xf32>
    %c0_48 = arith.constant 0 : index
    %c0_49 = arith.constant 0 : index
    %103 = vector.load %arg9[%c0_48, %c0_49] : memref<1x1xf32, #tpu.memory_space<vmem>>, vector<1x1xf32>
    %104 = vector.broadcast %103 : vector<1x1xf32> to vector<1x32xf32>
    %105 = arith.addf %102, %104 : vector<1x32xf32>
    %c0_50 = arith.constant 0 : index
    %c0_51 = arith.constant 0 : index
    %106 = vector.load %arg10[%c0_50, %c0_51] : memref<1x32xf32, #tpu.memory_space<vmem>>, vector<1x32xf32>
    tpu.vector_store %arg10[%c0_50, %c0_51], %105 {strides = array<i32>} : memref<1x32xf32, #tpu.memory_space<vmem>>, vector<1x32xf32>,
    return
  }
  func.func @transform_0(%arg0: i32) -> (i32, i32) {
    %c0_i32 = arith.constant 0 : i32
    %c0_i32_0 = arith.constant 0 : i32
    return %arg0, %c0_i32 : i32, i32
  }
  func.func @transform_1(%arg0: i32) -> (i32, i32, i32) {
    %c0_i32 = arith.constant 0 : i32
    %c0_i32_0 = arith.constant 0 : i32
    %c0_i32_1 = arith.constant 0 : i32
    %c0_i32_2 = arith.constant 0 : i32
    return %c0_i32, %c0_i32_0, %c0_i32_1 : i32, i32, i32
  }
  func.func @transform_2(%arg0: i32) -> (i32, i32) {
    %c0_i32 = arith.constant 0 : i32
    %c0_i32_0 = arith.constant 0 : i32
    %c0_i32_1 = arith.constant 0 : i32
    return %c0_i32, %c0_i32_0 : i32, i32
  }
  func.func @transform_3(%arg0: i32) -> (i32, i32) {
    %c0_i32 = arith.constant 0 : i32
    %c0_i32_0 = arith.constant 0 : i32
    %c0_i32_1 = arith.constant 0 : i32
    return %c0_i32, %c0_i32_0 : i32, i32
  }
  func.func @transform_4(%arg0: i32) -> (i32, i32) {
    %c0_i32 = arith.constant 0 : i32
    %c0_i32_0 = arith.constant 0 : i32
    %c0_i32_1 = arith.constant 0 : i32
    return %c0_i32, %c0_i32_0 : i32, i32
  }
  func.func @transform_5(%arg0: i32) -> (i32, i32) {
    %c0_i32 = arith.constant 0 : i32
    %c0_i32_0 = arith.constant 0 : i32
    %c0_i32_1 = arith.constant 0 : i32
    return %c0_i32, %c0_i32_0 : i32, i32
  }
  func.func @transform_6(%arg0: i32) -> (i32, i32) {
    %c0_i32 = arith.constant 0 : i32
    %c0_i32_0 = arith.constant 0 : i32
    %c0_i32_1 = arith.constant 0 : i32
    return %c0_i32, %c0_i32_0 : i32, i32
  }
  func.func @transform_7(%arg0: i32) -> (i32, i32) {
    %c0_i32 = arith.constant 0 : i32
    %c0_i32_0 = arith.constant 0 : i32
    %c0_i32_1 = arith.constant 0 : i32
    return %c0_i32, %c0_i32_0 : i32, i32
  }
  func.func @transform_8(%arg0: i32) -> (i32, i32) {
    %c0_i32 = arith.constant 0 : i32
    %c0_i32_0 = arith.constant 0 : i32
    %c0_i32_1 = arith.constant 0 : i32
    return %c0_i32, %c0_i32_0 : i32, i32
  }
  func.func @transform_9(%arg0: i32) -> (i32, i32) {
    %c0_i32 = arith.constant 0 : i32
    %c0_i32_0 = arith.constant 0 : i32
    return %c0_i32, %arg0 : i32, i32
  }
}

</mosaic_0001>

<bundles_post_ra>
// kernel: tpu_custom_call.1
= control target key start
LH: loop header
LB: loop body
LE: loop exit
PB: predicated region body
PF: predicated region fallthrough
CT: control target
= control target key end

     0   :  { %s1064_s0 = inlined_call_operand.vmem [shape: bf16[32,32], index: 0, kind: input, shape index: {}]   ;;  %s1065_s1 = inlined_call_operand.hbm [shape: bf16[3,32,32], index: 1, kind: input, shape index: {}]   ;;  %s1066_s2 = inlined_call_operand.vmem [shape: f32[1,32], index: 2, kind: input, shape index: {}]   ;;  %s1067_s3 = inlined_call_operand.vmem [shape: bf16[32,16], index: 3, kind: input, shape index: {}]   ;;  %s1068_s4 = inlined_call_operand.vmem [shape: f32[1,16], index: 4, kind: input, shape index: {}]   ;;  %s1069_s5 = inlined_call_operand.vmem [shape: bf16[16,16], index: 5, kind: input, shape index: {}]   ;;  %s1070_s6 = inlined_call_operand.vmem [shape: f32[1,16], index: 6, kind: input, shape index: {}]   ;;  %s1071_s7 = inlined_call_operand.vmem [shape: f32[1,16], index: 7, kind: input, shape index: {}]   ;;  %s1072_s8 = inlined_call_operand.<no memory space> [shape: f32[1,1], index: 8, kind: input, shape index: {}]   ;;  %s1073_s9 = inlined_call_operand.hbm [shape: f32[1,32], index: 9, kind: output, shape index: {}]  }
   0x1   :  { %v14_v0 = vstv %s1072_s8 }
   0x2   :  { %15 = vst [vmem:[#allocation2] sm:$0x1] %v14_v0 }
   0x3   :  { %16 = vsyncpa [#allocation4], 0 }
   0x4   :  { %17 = vsyncpa [#allocation5], 0  ;;  %s924_s11 = smov [#allocation3]   ;;  %s876_s15 = scalar_lea.hbm %s1065_s1, 768 }
   0x5   :  { %s25_s12 = sshll.u32 %s924_s11, 4  ;;  %p877_p0 = scmp.ne.s32.totalorder %s1065_s1, %s876_s15  ;;  %s26_s12 = int_to_ptr.vmem [resolvable:$true] %s25_s12 }
   0x6   :  { %p880_p1 = scmp.lt.u32.totalorder %s876_s15, %s1065_s1 }
   0x8   :  { %p882_p2 = pnand %p880_p1, %p877_p0 }
   0xa   :  { %885 = shalt.err (!%p882_p2)
}
   0xb   :  { %s886_s8 = scalar_lea.vmem %s26_s12, 768  ;;  %p891_p4 = scmp.lt.s32.totalorder %s26_s12, %s26_s12 }
   0xc   :  { %p887_p3 = scmp.ne.s32.totalorder %s26_s12, %s886_s8  ;;  %p892_p5 = scmp.lt.s32.totalorder %s886_s8, %s886_s8 }
   0xe   :  { %p893_p6 = por %p892_p5, %p891_p4 }
  0x10   :  { %p894_p7 = pnand %p893_p6, %p887_p3 }
  0x12   :  { %897 = shalt.err (!%p894_p7)
}
  0x13   :  { %s925_s20 = smov 64   ;;  %s926_s21 = smov 4  }
  0x14   :  { %31 = dma.hbm_to_vmem [thread:$0]  %s1065_s1, 768, %s26_s12, [#allocation4], %s925_s20, %s925_s20, %s926_s21  }
  0x15   :  { %920 = dma.done.wait [#allocation4], 768  }
  0x16   :  { %921 = vsyncadd [#allocation4], 4294966528  ;;  %v58_v1 = vlaneseq  ;;  %v863_v6 = vld [vmem:[#allocation3 + $0x10] sm:$0xff]   ;;  %v864_v7 = vld [vmem:[#allocation3 + $0x18] sm:$0xff]   ;;  %vm205_vm0 = vcmask 261120   ;;  %vm115_vm1 = vcmask 1040384  }
  0x17   :  { %789 = vmatprep.subr.bf16.mxu0 %v863_v6  ;;  %v50_v9 = vld [vmem:[%s1064_s0] sm:$0xff]   ;;  %v52_v14 = vld [vmem:[%s1064_s0 + $0x8] sm:$0xff]   ;;  %vm328_vm3 = vcmask 1046528   ;;  %vm563_vm7 = vcmask 130048   ;;  %vm928_vm8 = vmmov 0   ;;  %s931_s14 = smov [#allocation6]  }
  0x18   :  { %v997_v2 = vshrl.u32 %v58_v1, 7  ;;  %790 = vmatpush3.bf16.msra.mxu0 %v863_v6  ;;  %v54_v12 = vunpack.c.l.bf16 %v50_v9  ;;  %v55_v13 = vunpack.c.h.bf16 %v50_v9  ;;  %v56_v15 = vunpack.c.l.bf16 %v52_v14  ;;  %v867_v16 = vld [vmem:[#allocation3] sm:$0xff]   ;;  %793 = vmatprep.mubr.msk.bf16.mxu0 %vm205_vm0, %v50_v9  ;;  %v868_v23 = vld [vmem:[#allocation3 + $0x8] sm:$0xff]   ;;  %v750_v52 = vld [vmem:[%s1066_s2] ss:$0 sm:$0xff]  ;;  %s727_s15 = sshll.u32 %s931_s14, 4  ;;  %s728_s15 = int_to_ptr.vmem [resolvable:$true] %s727_s15 }
  0x19   :  { %791 = vmatprep.subr.bf16.mxu0 %v864_v7  ;;  %v57_v22 = vunpack.c.h.bf16 %v52_v14  ;;  %v869_v33 = vld [vmem:[#allocation3 + $0x20] sm:$0xff]   ;;  %v870_v44 = vld [vmem:[#allocation3 + $0x28] sm:$0xff]   ;;  %vm840_vm9 = vmpackc.low %vm563_vm7, %vm563_vm7  ;;  %vm719_vm10 = vcmask 253952   ;;  %s898_s16 = scalar_lea.vmem %s728_s15, 16  ;;  %s902_s17 = scalar_lea.vmem %s728_s15, 32 }
  0x1a   :  { %v67_v3 = vand.u32 15, %v997_v2  ;;  %v61_v4 = vadd.s32 16, %v997_v2  ;;  %v60_v5 = vadd.s32 8, %v997_v2  ;;  %v116_v17 = vrot.slane %v54_v12, 7  ;;  %v871_v50 = vld [vmem:[%s1067_s3] sm:$0xff]   ;;  %v872_v51 = vld [vmem:[%s1067_s3 + $0x8] sm:$0xff]   ;;  %p899_p8 = scmp.ne.s32.totalorder %s728_s15, %s898_s16  ;;  %p903_p9 = scmp.lt.s32.totalorder %s728_s15, %s728_s15 }
  0x1b   :  { %v117_v18 = vrot.slane %v55_v13, 7  ;;  %v119_v25 = vrot.slane %v56_v15, 7  ;;  %v330_v27 = vrot.slane %v55_v13, 1  ;;  %v332_v28 = vrot.slane %v56_v15, 1  ;;  %813 = vmatprep.subr.bf16.mxu1 %v871_v50  ;;  %p904_p10 = scmp.lt.s32.totalorder %s902_s17, %s898_s16 }
  0x1c   :  { %v128_v8 = vadd.s32 4294967295, %v67_v3  ;;  %v81_v10 = vand.u32 15, %v61_v4  ;;  %v74_v11 = vand.u32 15, %v60_v5  ;;  %792 = vmatpush3.bf16.msra.mxu0 %v864_v7  ;;  %v127_v21 = vsel %vm115_vm1, 0.0, %v116_v17  ;;  %814 = vmatpush3.bf16.msra.mxu1 %v871_v50  ;;  %v873_v4 = vld [vmem:[%s1069_s5] sm:$0xff]  }
  0x1d   :  { %v118_v24 = vsel %vm115_vm1, %v116_v17, %v117_v18  ;;  %797 = vmatprep.subr.bf16.mxu0 %v867_v16  ;;  %v121_v30 = vrot.slane %v57_v22, 7  ;;  %v329_v31 = vrot.slane %v54_v12, 1  ;;  %v120_v32 = vsel %vm115_vm1, %v117_v18, %v119_v25  ;;  %815 = vmatprep.subr.bf16.mxu1 %v872_v51  ;;  %v751_v5 = vld [vmem:[%s1068_s4] ss:$0 sm:$0xff]  ;;  %p905_p11 = por %p904_p10, %p903_p9 }
  0x1e   :  { %vm132_vm2 = vcmp.ge.s32.totalorder %v128_v8, 0  ;;  %v130_v19 = vadd.s32 4294967295, %v81_v10  ;;  %v342_v20 = vadd.s32 1, %v74_v11  ;;  %v62_v34 = vadd.s32 24, %v997_v2 }
  0x1f   :  { %v152_v26 = vsel %vm132_vm2, %v127_v21, 0.0  ;;  %794 = vmatmul.mubr.msk.bf16.vlgmr.msra.gmra.mrb[0].mxu0 %vm205_vm0, %v52_v14  ;;  %v333_v35 = vsel %vm328_vm3, %v330_v27, %v332_v28  ;;  %v122_v36 = vsel %vm115_vm1, %v119_v25, %v121_v30  ;;  %v331_v38 = vsel %vm328_vm3, %v329_v31, %v330_v27  ;;  %p906_p12 = pnand %p905_p11, %p899_p8 }
  0x20   :  { %v156_v29 = vpack.c.bf16 %v118_v24, %v152_v26  ;;  %798 = vmatpush3.bf16.msra.mxu0 %v867_v16  ;;  %vm134_vm4 = vcmp.ge.s32.totalorder %v130_v19, 0  ;;  %vm350_vm5 = vcmp.lt.s32.totalorder %v342_v20, 16  ;;  %v88_v40 = vand.u32 15, %v62_v34  ;;  %816 = vmatpush3.bf16.msra.mxu1 %v872_v51  ;;  %v756_v24 = vld [vmem:[%s1070_s6] ss:$0 sm:$0xff] }
  0x21   :  { %799 = vmatprep.subr.bf16.mxu0 %v868_v23  ;;  %v154_v37 = vsel %vm134_vm4, %v120_v32, 0.0  ;;  %v366_v39 = vsel %vm350_vm5, %v333_v35, 0.0  ;;  %v334_v43 = vrot.slane %v57_v22, 1  ;;  %821 = vmatprep.subr.bf16.mxu1 %v873_v4  ;;  %v927_v20 = vmov 0.0|0.0   ;;  %v624_v22 = vld [vmem:[#allocation2] sm:$0x1] }
  0x22   :  { %801 = vmatprep.mubr.msk.bf16.mxu0 %vm205_vm0, %v156_v29  ;;  %v157_v41 = vpack.c.bf16 %v122_v36, %v154_v37  ;;  %v369_v42 = vpack.c.bf16 %v366_v39, %v331_v38  ;;  %v344_v45 = vadd.s32 1, %v88_v40  ;;  %v929_v21 = vmov 0.0   ;;  %v623_v39 = vld [vmem:[%s1071_s7] sm:$0x1] }
  0x23   :  { %v340_v46 = vsel %vm328_vm3, %v334_v43, 0.0  ;;  %v335_v47 = vsel %vm328_vm3, %v332_v28, %v334_v43  ;;  %v632_v40 = vsub.s32 0, %v997_v2 }
  0x24   :  { %800 = vmatpush3.bf16.msra.mxu0 %v868_v23  ;;  %vm352_vm6 = vcmp.lt.s32.totalorder %v344_v45, 16  ;;  %v930_v23 = vmov 0  }
  0x25   :  { %805 = vmatprep.subr.bf16.mxu0 %v869_v33  ;;  %v368_v48 = vsel %vm352_vm6, %v340_v46, 0.0  ;;  %862 = vset.pattern.permute.xlu0 %v930_v23 }
  0x26   :  { %v370_v49 = vpack.c.bf16 %v368_v48, %v335_v47  ;;  %627 = vperm.xlu0 %862, %v624_v22  }
  0x2b   :  { %802 = vmatmul.mubr.msk.bf16.vlgmr.msra.gmra.mrb[0].mxu0 %vm205_vm0, %v157_v41 }
  0x2c   :  { %806 = vmatpush3.bf16.msra.mxu0 %v869_v33  ;;  %809 = vmatprep.mubr.msk.bf16.mxu0 %vm205_vm0, %v369_v42 }
  0x2d   :  { %807 = vmatprep.subr.bf16.mxu0 %v870_v44 }
  0x30   :  { %808 = vmatpush3.bf16.msra.mxu0 %v870_v44 }
  0x37   :  { %810 = vmatmul.mubr.msk.bf16.vlgmr.msra.gmra.mrb[0].mxu0 %vm205_vm0, %v370_v49 }
  0xa5   :  { %v628_v41 = vpop.permute.xlu0 %627 }
  0xa6   :  { %v633_v42 = vrot.slane %v628_v41, %v632_v40 }
 0x10a   :  { %v811_v53 = vpop.f32.mrb[0].mxu0 }
 0x10b   :  { %v456_v54 = vadd.f32 %v811_v53, %v750_v52  ;;  %v428_v55 = vpop.f32.mrb[1].mxu0 }
 0x10c   :  { %v454_v56 = vadd.f32 %v750_v52, %v428_v55  ;;  %v812_v57 = vpop.f32.mrb[2].mxu0 }
 0x10d   :  { %v457_v58 = vadd.f32 %v812_v57, %v750_v52  ;;  %v431_v59 = vpop.f32.mrb[3].mxu0  ;;  %v460_v61 = vmax.f32 %v456_v54, 0.0 }
 0x10e   :  { %v455_v60 = vadd.f32 %v750_v52, %v431_v59  ;;  %v458_v63 = vmax.f32 %v454_v56, 0.0 }
 0x10f   :  { %v461_v62 = vmax.f32 %v457_v58, 0.0 }
 0x110   :  { %v459_v0 = vmax.f32 %v455_v60, 0.0 }
 0x111   :  { %v463_v1 = vpack.c.bf16 %v461_v62, %v460_v61 }
 0x112   :  { %v462_v3 = vpack.c.bf16 %v459_v0, %v458_v63 }
 0x114   :  { %817 = vmatprep.mubr.msk.bf16.mxu1 %vm205_vm0, %v462_v3 }
 0x115   :  { %818 = vmatmul.mubr.msk.bf16.vlgmr.msra.gmra.mrb[0].mxu1 %vm205_vm0, %v463_v1 }
 0x116   :  { %822 = vmatpush3.bf16.msra.mxu1 %v873_v4 }
 0x117   :  { %838 = vmatprep.subr.bf16.mxu1 %v927_v20 }
 0x1e8   :  { %v819_v6 = vpop.f32.mrb[0].mxu1 }
 0x1e9   :  { %v536_v7 = vadd.f32 %v819_v6, %v751_v5  ;;  %v527_v8 = vpop.f32.mrb[1].mxu1 }
 0x1ea   :  { %v528_v9 = vadd.f32 %v751_v5, %v527_v8  ;;  %v820_v10 = vpop.f32.mrb[2].mxu1 }
 0x1eb   :  { %v539_v11 = vadd.f32 %v820_v10, %v751_v5  ;;  %v530_v12 = vpop.f32.mrb[3].mxu1  ;;  %v544_v14 = vmax.f32 %v536_v7, 0.0 }
 0x1ec   :  { %v531_v13 = vadd.f32 %v751_v5, %v530_v12  ;;  %v542_v16 = vmax.f32 %v528_v9, 0.0 }
 0x1ed   :  { %v545_v15 = vmax.f32 %v539_v11, 0.0 }
 0x1ee   :  { %v543_v17 = vmax.f32 %v531_v13, 0.0 }
 0x1ef   :  { %v547_v18 = vpack.c.bf16 %v545_v15, %v544_v14 }
 0x1f0   :  { %v546_v19 = vpack.c.bf16 %v543_v17, %v542_v16 }
 0x1f2   :  { %823 = vmatprep.mubr.msk.bf16.mxu1 %vm563_vm7, %v546_v19 }
 0x1f3   :  { %824 = vmatmul.mubr.msk.bf16.vlgmr.msra.gmra.mrb[4].mxu1 %vm563_vm7, %v547_v18 }
 0x1f4   :  { %835 = vmatprep.mubr.msk.f32.mxu1 %vm928_vm8, %v929_v21 }
 0x2c6   :  { %v825_v25 = vpop.f32.mrb[4].mxu1 }
 0x2c7   :  { %v613_v26 = vadd.f32 %v825_v25, %v756_v24  ;;  %v604_v27 = vpop.f32.mrb[5].mxu1 }
 0x2c8   :  { %v605_v28 = vadd.f32 %v756_v24, %v604_v27  ;;  %v826_v29 = vpop.f32.mrb[6].mxu1 }
 0x2c9   :  { %v616_v30 = vadd.f32 %v826_v29, %v756_v24  ;;  %v607_v31 = vpop.f32.mrb[7].mxu1  ;;  %v621_v33 = vmax.f32 %v613_v26, 0.0 }
 0x2ca   :  { %v608_v32 = vadd.f32 %v756_v24, %v607_v31  ;;  %v619_v35 = vmax.f32 %v605_v28, 0.0 }
 0x2cb   :  { %v622_v34 = vmax.f32 %v616_v30, 0.0 }
 0x2cc   :  { %v620_v36 = vmax.f32 %v608_v32, 0.0 }
 0x2cd   :  { %v843_v37 = vpack.c.bf16 %v622_v34, %v621_v33 }
 0x2ce   :  { %v839_v38 = vpack.c.bf16 %v620_v36, %v619_v35 }
 0x2d0   :  { %841 = vmatpush3.bf16.xpose.msk.msra.mxu1 %vm840_vm9, %v839_v38 }
 0x2d1   :  { %842 = vmatprep.subr.bf16.mxu1 %v927_v20 }
 0x2d8   :  { %845 = vmatpush3.bf16.xpose.msk.msra.mxu1 %vm840_vm9, %v843_v37 }
 0x2df   :  { %836 = vmatmul.mubr.msk.f32.vlgmr.msra.gmra.mrb[8].mxu1 %vm563_vm7, %v623_v39 }
 0x3b2   :  { %v715_v43 = vpop.f32.mrb[8].mxu1 }
 0x3b3   :  { %v716_v44 = vadd.f32 %v715_v43, %v633_v42  ;;  %v837_v45 = vpop.f32.mrb[9].mxu1 }
 0x3b5   :  { %720 = vst.msk [vmem:[#allocation6] sm:$0x1] %vm719_vm10, %v716_v44 }
 0x3b6   :  { %909 = shalt.err (!%p906_p12)
}
 0x3b7   :  { %s910_s19 = scalar_lea.hbm %s1073_s9, 16 }
 0x3b8   :  { %p911_p13 = scmp.ne.s32.totalorder %s1073_s9, %s910_s19  ;;  %p914_p0 = scmp.lt.u32.totalorder %s910_s19, %s1073_s9 }
 0x3ba   :  { %p916_p1 = pnand %p914_p0, %p911_p13 }
 0x3bc   :  { %919 = shalt.err (!%p916_p1)
}
 0x3bd   :  { %730 = dma.vmem_to_hbm [thread:$0]  %s728_s15, 16, %s1073_s9, [#allocation5]  }
 0x3be   :  { %922 = dma.done.wait [#allocation5], 16  }
 0x3bf   :  { %923 = vsyncadd [#allocation5], 4294967280 }
 0x3c0   :  { %734 = vsyncpa [#allocation4], 1 }
 0x3c1   :  { %735 = vsyncpa [#allocation5], 1 }

</bundles_post_ra>
